<compile_context>
chip_gen: v6e
topology: v6e:2x2x1
jax: 0.10.0
libtpu: 0.0.40
codegen_flags: <defaults>
</compile_context>

<pallas_src>
import functools
import math

import jax
import jax.numpy as jnp
from jax.experimental import pallas as pl
from jax.experimental.pallas import tpu as pltpu


# ----------------------------- tuning constants ------------------------------

_TARGET_BLOCK_ELEMS = 512 * 1024      # ~2 MiB f32-equivalent per block
_MIN_GRID_STEPS = 8                   # >= 4 steps per TensorCore on v7x megacore
_MXU_REDUCE_MAX_DIM = 4096            # cap on the ones() MXU operand (<= 2 MiB)
_VMEM_LIMIT_BYTES = 32 * 1024 * 1024  # small blocks fit easily on v5e/v6e/v7x


def _cdiv(a, b):
    return -(-a // b)


def _round_up(a, b):
    return _cdiv(a, b) * b


def _sublane_multiple(dtype):
    # native sublane packing: 8 for 4-byte, 16 for 2-byte, 32 for 1-byte dtypes
    itemsize = jnp.dtype(dtype).itemsize
    return max(8, 32 // max(1, itemsize))


# ------------------------------- kernels -------------------------------------


def _rms_rows_kernel(x_ref, o_ref, *, eps, inv_d, use_mxu):
    """One full logical row per sublane row: y = x * rsqrt(mean(x^2) + eps)."""
    xf = x_ref[...].astype(jnp.float32)
    sq = xf * xf
    if use_mxu:
        # Cross-lane reduce on the idle MXU: dot against ones() replicates each
        # row's sum into every lane; take lane 0.  Keeps the XLU off the
        # critical path on v7x / bf16-on-v6e.
        ones = jnp.ones((sq.shape[-1], 128), jnp.float32)
        ssq = jax.lax.dot_general(
            sq, ones, (((1,), (0,)), ((), ())),
            preferred_element_type=jnp.float32)[:, :1]
    else:
        ssq = jnp.sum(sq, axis=-1, keepdims=True)
    inv = jax.lax.rsqrt(ssq * inv_d + eps)
    # f32 math throughout; single cast at the store (better precision, and
    # cheaper on v5e which has no native bf16 VALU).
    o_ref[...] = (xf * inv).astype(o_ref.dtype)


def _sumsq_kernel(x_ref, ssq_ref, *, d, tk, use_mxu):
    """Pass A of the D-tiled path: accumulate per-row sum of squares over k."""
    k = pl.program_id(1)

    @pl.when(k == 0)
    def _():
        ssq_ref[...] = jnp.zeros_like(ssq_ref)

    xf = x_ref[...].astype(jnp.float32)
    if d % tk != 0:
        # Last K tile is partial: mask the out-of-range lanes in-kernel instead
        # of padding the whole (huge) tensor in HBM.
        col = jax.lax.broadcasted_iota(jnp.int32, xf.shape, 1) + k * tk
        xf = jnp.where(col < d, xf, 0.0)
    sq = xf * xf
    if use_mxu:
        ones = jnp.ones((sq.shape[-1], 128), jnp.float32)
        part = jax.lax.dot_general(
            sq, ones, (((1,), (0,)), ((), ())),
            preferred_element_type=jnp.float32)[:, :1]
    else:
        part = jnp.sum(sq, axis=-1, keepdims=True)
    ssq_ref[...] += part


def _apply_kernel(x_ref, ssq_ref, o_ref, *, eps, inv_d):
    """Pass B of the D-tiled path: y = x * rsqrt(sumsq/D + eps)."""
    inv = jax.lax.rsqrt(ssq_ref[...] * inv_d + eps)          # (br, 1) f32
    o_ref[...] = (x_ref[...].astype(jnp.float32) * inv).astype(o_ref.dtype)


# ------------------------------- wrapper --------------------------------------


def ms_rms_norm(x, normalized_shape, eps=1e-5, *,
                force_two_pass=False, two_pass_tk=2048):
    """Pallas TPU implementation of MSRMSNorm.forward (no affine params)."""
    if isinstance(normalized_shape, int):
        normalized_shape = (normalized_shape,)
    normalized_shape = tuple(int(s) for s in normalized_shape)
    nd = len(normalized_shape)
    if nd == 0 or x.ndim < nd or tuple(x.shape[x.ndim - nd:]) != normalized_shape:
        raise ValueError(
            f"trailing dims {tuple(x.shape[x.ndim - nd:])} != normalized_shape "
            f"{normalized_shape}")

    D = math.prod(normalized_shape)
    lead = x.shape[: x.ndim - nd]
    rows = int(math.prod(lead)) if lead else 1

    dtype = x.dtype
    sub = _sublane_multiple(dtype)
    inv_d = 1.0 / D

    # Flatten to (rows, D).  Collapsing the leading dims keeps the last dim on
    # lanes and is layout-preserving (no HBM relayout) for tile-aligned shapes.
    x2 = x.reshape(rows, D)

    def _row_block(last_dim):
        """Rows per block: ~2 MiB f32-equiv, >= _MIN_GRID_STEPS steps if possible."""
        br = max(1, _TARGET_BLOCK_ELEMS // max(1, last_dim))
        if rows >= _MIN_GRID_STEPS * sub:
            br = min(br, _cdiv(rows, _MIN_GRID_STEPS))
        if br >= rows:
            return rows                        # one full-extent block (always legal)
        br = max(sub, (br // sub) * sub)       # keep the (8,128) sublane rule
        return min(br, rows)

    # Two-pass only when even a minimal (sub x D) block blows the block budget.
    two_pass = force_two_pass or (sub * D > 2 * _TARGET_BLOCK_ELEMS)

    if not two_pass:
        # ------------------- single-pass row-wise kernel ---------------------
        block_rows = _row_block(D)
        grid = (pl.cdiv(rows, block_rows),)    # partial tail block allowed
        use_mxu = (D % 128 == 0) and (128 <= D <= _MXU_REDUCE_MAX_DIM)

        out = pl.pallas_call(
            functools.partial(_rms_rows_kernel, eps=eps, inv_d=inv_d,
                              use_mxu=use_mxu),
            out_shape=jax.ShapeDtypeStruct((rows, D), dtype),
            grid_spec=pltpu.PrefetchScalarGridSpec(
                num_scalar_prefetch=0,
                grid=grid,
                in_specs=[pl.BlockSpec((block_rows, D), lambda i: (i, 0))],
                out_specs=pl.BlockSpec((block_rows, D), lambda i: (i, 0)),
            ),
            compiler_params=pltpu.CompilerParams(
                dimension_semantics=("parallel",),
                vmem_limit_bytes=_VMEM_LIMIT_BYTES),
        )(x2)
        return out.reshape(x.shape)

    # ------------- two-pass D-tiled path (very large normalized dims) --------
    tk = max(128, (int(two_pass_tk) // 128) * 128)   # lane-dense K tile
    tk = min(tk, _round_up(D, 128))
    nk = _cdiv(D, tk)
    block_rows = _row_block(tk)
    grid = (pl.cdiv(rows, block_rows), nk)
    use_mxu = tk <= _MXU_REDUCE_MAX_DIM

    ssq = pl.pallas_call(
        functools.partial(_sumsq_kernel, d=D, tk=tk, use_mxu=use_mxu),
        out_shape=jax.ShapeDtypeStruct((rows, 1), jnp.float32),
        grid_spec=pltpu.PrefetchScalarGridSpec(
            num_scalar_prefetch=0,
            grid=grid,
            in_specs=[pl.BlockSpec((block_rows, tk), lambda i, k: (i, k))],
            out_specs=pl.BlockSpec((block_rows, 1), lambda i, k: (i, 0)),
        ),
        compiler_params=pltpu.CompilerParams(
            dimension_semantics=("parallel", "arbitrary"),
            vmem_limit_bytes=_VMEM_LIMIT_BYTES),
    )(x2)

    out = pl.pallas_call(
        functools.partial(_apply_kernel, eps=eps, inv_d=inv_d),
        out_shape=jax.ShapeDtypeStruct((rows, D), dtype),
        grid_spec=pltpu.PrefetchScalarGridSpec(
            num_scalar_prefetch=0,
            grid=grid,
            in_specs=[pl.BlockSpec((block_rows, tk), lambda i, k: (i, k)),
                      pl.BlockSpec((block_rows, 1), lambda i, k: (i, 0))],
            out_specs=pl.BlockSpec((block_rows, tk), lambda i, k: (i, k)),
        ),
        compiler_params=pltpu.CompilerParams(
            dimension_semantics=("parallel", "parallel"),
            vmem_limit_bytes=_VMEM_LIMIT_BYTES),
    )(x2, ssq)

    return out.reshape(x.shape)


class MSRMSNorm:
    """JAX/Pallas port of the PyTorch MSRMSNorm module (no learnable params)."""

    def __init__(self, normalized_shape, eps=1e-5):
        if isinstance(normalized_shape, int):
            normalized_shape = (normalized_shape,)
        self.normalized_shape = tuple(normalized_shape)
        self.num_dims = len(self.normalized_shape)
        self.eps = eps

    def __call__(self, x):
        return ms_rms_norm(x, self.normalized_shape, self.eps)


# ------------------------------- reference & test -----------------------------


def _reference(x, normalized_shape, eps):
    nd = len(normalized_shape)
    axes = tuple(range(x.ndim - nd, x.ndim))
    xf = x.astype(jnp.float32)
    ms = jnp.mean(xf * xf, axis=axes, keepdims=True)
    return (xf * jax.lax.rsqrt(ms + eps)).astype(x.dtype)


if __name__ == "__main__":
    key = jax.random.PRNGKey(0)
    k1, k2, k3, k4 = jax.random.split(key, 4)

    # 1) NCHW input, normalize over (H, W): D = 256, lane-dense single-pass
    #    (MXU-based cross-lane reduce).
    B, C, H, W = 2, 4, 16, 16
    x = jax.random.normal(k1, (B, C, H, W), dtype=jnp.float32)
    m_hw = MSRMSNorm((H, W), eps=1e-5)
    y = jax.block_until_ready(m_hw(x))
    y_ref = _reference(x, (H, W), 1e-5)
    assert y.shape == x.shape and y.dtype == x.dtype
    assert jnp.allclose(y, y_ref, atol=1e-5, rtol=1e-5), "mismatch (H,W) path"

    # 2) Single-int normalized_shape (last dim only, D = 16 < 128): direct
    #    small-D path (no regroup reshapes), jnp.sum reduce.
    y1 = jax.block_until_ready(MSRMSNorm(W, eps=1e-5)(x))
    y1_ref = _reference(x, (W,), 1e-5)
    assert jnp.allclose(y1, y1_ref, atol=1e-5, rtol=1e-5), "mismatch (W,) path"

    # 3) Two-pass D-tiled path (forced, small tk so the K axis has several steps
    #    and the partial last K tile exercises the in-kernel lane mask).
    x3 = jax.random.normal(k2, (4, 8, 320), dtype=jnp.float32)
    y3 = jax.block_until_ready(
        ms_rms_norm(x3, (320,), 1e-5, force_two_pass=True, two_pass_tk=128))
    y3_ref = _reference(x3, (320,), 1e-5)
    assert jnp.allclose(y3, y3_ref, atol=1e-5, rtol=1e-5), "mismatch two-pass path"

    # 4) bf16 input, multi-step grid; f32 math + single cast at the store.
    xb = jax.random.normal(k3, (4, 40, 256), dtype=jnp.bfloat16)
    yb = jax.block_until_ready(MSRMSNorm((256,), eps=1e-5)(xb))
    yb_ref = _reference(xb, (256,), 1e-5)
    assert yb.dtype == xb.dtype
    assert jnp.allclose(yb.astype(jnp.float32), yb_ref.astype(jnp.float32),
                        atol=2e-2, rtol=2e-2), "mismatch bf16 path"

    # 5) Rows not a multiple of block_rows: partial trailing row block is
    #    handled in-kernel (no host-side pad/slice).
    x5 = jax.random.normal(k4, (200, 256), dtype=jnp.float32)
    y5 = jax.block_until_ready(MSRMSNorm((256,), eps=1e-5)(x5))
    y5_ref = _reference(x5, (256,), 1e-5)
    assert jnp.allclose(y5, y5_ref, atol=1e-5, rtol=1e-5), "mismatch ragged rows"

    print("KERNEL_OK")
</pallas_src>

<mosaic_0001>
module attributes {stable_mosaic.version = 11 : i64} {
  func.func @_rms_rows_kernel(%arg0: i32, %arg1: memref<8x256xf32, #tpu.memory_space<vmem>>, %arg2: memref<8x256xf32, #tpu.memory_space<vmem>>) attributes {dimension_semantics = [#tpu.dimension_semantics<parallel>], iteration_bounds = array<i64: 1>, scalar_prefetch = 0 : i64, scratch_operands = 0 : i64, tpu.core_type = #tpu.core_type<tc>, window_params = [{transform_indices = @transform_0, window_bounds = array<i64: 8, 256>}, {transform_indices = @transform_1, window_bounds = array<i64: 8, 256>}]} {
    %c0 = arith.constant 0 : index
    %c0_0 = arith.constant 0 : index
    %0 = vector.load %arg1[%c0, %c0_0] : memref<8x256xf32, #tpu.memory_space<vmem>>, vector<8x256xf32>
    %1 = arith.mulf %0, %0 : vector<8x256xf32>
    %cst = arith.constant 1.000000e+00 : f32
    %2 = vector.broadcast %cst : f32 to vector<256x128xf32>
    %cst_1 = arith.constant dense<0.000000e+00> : vector<8x128xf32>
    %3 = tpu.matmul %1, %2, %cst_1 {dimension_numbers = #tpu.dot_dimension_numbers<[1], [0], [0], [1], [0, 0, 1, 1], [], []>} : vector<8x256xf32>, vector<256x128xf32>, vector<8x128xf32> -> vector<8x128xf32>
    %4 = vector.extract_strided_slice %3 {offsets = [0, 0], sizes = [8, 1], strides = [1, 1]} : vector<8x128xf32> to vector<8x1xf32>
    %cst_2 = arith.constant 3.906250e-03 : f32
    %5 = vector.broadcast %cst_2 : f32 to vector<8x1xf32>
    %6 = arith.mulf %4, %5 : vector<8x1xf32>
    %cst_3 = arith.constant 9.99999974E-6 : f32
    %7 = vector.broadcast %cst_3 : f32 to vector<8x1xf32>
    %8 = arith.addf %6, %7 : vector<8x1xf32>
    %9 = math.rsqrt %8 : vector<8x1xf32>
    %10 = vector.broadcast %9 : vector<8x1xf32> to vector<8x256xf32>
    %11 = arith.mulf %0, %10 : vector<8x256xf32>
    %c0_4 = arith.constant 0 : index
    %c0_5 = arith.constant 0 : index
    %12 = vector.load %arg2[%c0_4, %c0_5] : memref<8x256xf32, #tpu.memory_space<vmem>>, vector<8x256xf32>
    tpu.vector_store %arg2[%c0_4, %c0_5], %11 {strides = array<i32>} : memref<8x256xf32, #tpu.memory_space<vmem>>, vector<8x256xf32>,
    return
  }
  func.func @transform_0(%arg0: i32) -> (i32, i32) {
    %c0_i32 = arith.constant 0 : i32
    %c0_i32_0 = arith.constant 0 : i32
    return %arg0, %c0_i32 : i32, i32
  }
  func.func @transform_1(%arg0: i32) -> (i32, i32) {
    %c0_i32 = arith.constant 0 : i32
    %c0_i32_0 = arith.constant 0 : i32
    return %arg0, %c0_i32 : i32, i32
  }
}

</mosaic_0001>

<bundles_post_ra>
// kernel: tpu_custom_call.1
= control target key start
LH: loop header
LB: loop body
LE: loop exit
PB: predicated region body
PF: predicated region fallthrough
CT: control target
= control target key end

     0   :  { %6 = vsyncpa [#allocation3], 0  ;;  %s228_s0 = inlined_call_operand.hbm [shape: f32[8,256], index: 0, kind: input, shape index: {}]   ;;  %s229_s1 = inlined_call_operand.hbm [shape: f32[8,256], index: 1, kind: output, shape index: {}]  }
   0x1   :  { %7 = vsyncpa [#allocation4], 0  ;;  %s208_s6 = smov [#allocation2]  }
   0x2   :  { %s14_s7 = sshll.u32 %s208_s6, 4  ;;  %s15_s7 = int_to_ptr.vmem [resolvable:$true] %s14_s7 }
   0x3   :  { %s172_s8 = scalar_lea.vmem %s15_s7, 256  ;;  %p177_p1 = scmp.lt.s32.totalorder %s15_s7, %s15_s7 }
   0x4   :  { %p173_p0 = scmp.ne.s32.totalorder %s15_s7, %s172_s8  ;;  %p178_p2 = scmp.lt.s32.totalorder %s172_s8, %s172_s8 }
   0x6   :  { %p179_p3 = por %p178_p2, %p177_p1 }
   0x8   :  { %p180_p4 = pnand %p179_p3, %p173_p0 }
   0xa   :  { %183 = shalt.err (!%p180_p4)
}
   0xb   :  { %17 = dma.hbm_to_vmem [thread:$0]  %s228_s0, 256, %s15_s7, [#allocation3]  }
   0xc   :  { %204 = dma.done.wait [#allocation3], 256  }
   0xd   :  { %205 = vsyncadd [#allocation3], 4294967040  ;;  %v209_v0 = vmov 1.0   ;;  %v22_v1 = vld [vmem:[#allocation2 + $0x8] sm:$0xff]  ;;  %v21_v3 = vld [vmem:[#allocation2] sm:$0xff]  ;;  %v210_v5 = vmov 0  }
   0xe   :  { %122 = vmatprep.subr.mxu0 %v209_v0  ;;  %v24_v2 = vmul.f32 %v22_v1, %v22_v1  ;;  %v23_v4 = vmul.f32 %v21_v3, %v21_v3  ;;  %161 = vset.pattern.permute.xlu0 %v210_v5  ;;  %s211_s0 = smov [#allocation5]  }
   0xf   :  { %123 = vmatpush3.msra.mxu0 %v209_v0  ;;  %s113_s11 = sshll.u32 %s211_s0, 4  ;;  %s114_s11 = int_to_ptr.vmem [resolvable:$true] %s113_s11 }
  0x10   :  { %124 = vmatprep.subr.mxu0 %v209_v0  ;;  %89 = vmatprep.mubr.f32.mxu0 %v24_v2  ;;  %s184_s12 = scalar_lea.vmem %s114_s11, 256  ;;  %p189_p6 = scmp.lt.s32.totalorder %s114_s11, %s114_s11 }
  0x11   :  { %125 = vmatpush3.msra.mxu0 %v209_v0  ;;  %p185_p5 = scmp.ne.s32.totalorder %s114_s11, %s184_s12  ;;  %p190_p7 = scmp.lt.s32.totalorder %s184_s12, %s184_s12 }
  0x12   :  { %126 = vmatprep.subr.mxu0 %v209_v0 }
  0x13   :  { %127 = vmatpush3.msra.mxu0 %v209_v0  ;;  %p191_p8 = por %p190_p7, %p189_p6 }
  0x14   :  { %128 = vmatprep.subr.mxu0 %v209_v0 }
  0x15   :  { %129 = vmatpush3.msra.mxu0 %v209_v0  ;;  %p192_p9 = pnand %p191_p8, %p185_p5 }
  0x16   :  { %130 = vmatprep.subr.mxu0 %v209_v0 }
  0x17   :  { %131 = vmatpush3.msra.mxu0 %v209_v0 }
  0x18   :  { %132 = vmatprep.subr.mxu0 %v209_v0 }
  0x19   :  { %133 = vmatpush3.msra.mxu0 %v209_v0 }
  0x1a   :  { %134 = vmatprep.subr.mxu0 %v209_v0 }
  0x1b   :  { %135 = vmatpush3.msra.mxu0 %v209_v0 }
  0x1c   :  { %136 = vmatprep.subr.mxu0 %v209_v0 }
  0x1d   :  { %137 = vmatpush3.msra.mxu0 %v209_v0 }
  0x1e   :  { %138 = vmatprep.subr.mxu0 %v209_v0 }
  0x1f   :  { %139 = vmatpush3.msra.mxu0 %v209_v0 }
  0x20   :  { %140 = vmatprep.subr.mxu0 %v209_v0 }
  0x21   :  { %141 = vmatpush3.msra.mxu0 %v209_v0 }
  0x22   :  { %142 = vmatprep.subr.mxu0 %v209_v0 }
  0x23   :  { %143 = vmatpush3.msra.mxu0 %v209_v0 }
  0x24   :  { %144 = vmatprep.subr.mxu0 %v209_v0 }
  0x25   :  { %145 = vmatpush3.msra.mxu0 %v209_v0 }
  0x26   :  { %146 = vmatprep.subr.mxu0 %v209_v0 }
  0x27   :  { %147 = vmatpush3.msra.mxu0 %v209_v0 }
  0x28   :  { %148 = vmatprep.subr.mxu0 %v209_v0 }
  0x29   :  { %149 = vmatpush3.msra.mxu0 %v209_v0 }
  0x2a   :  { %150 = vmatprep.subr.mxu0 %v209_v0 }
  0x2b   :  { %151 = vmatpush3.msra.mxu0 %v209_v0 }
  0x2c   :  { %152 = vmatprep.subr.mxu0 %v209_v0 }
  0x2d   :  { %153 = vmatpush3.msra.mxu0 %v209_v0 }
  0x2e   :  { %90 = vmatmul.mubr.f32.vlgmr.msra.gmra.mxu0 %v23_v4 }
  0xee   :  { %v154_v6 = vpop.f32.mrf.mxu0 }
  0xf0   :  { %v155_v7 = vpop.f32.mrf.mxu0 }
  0xf1   :  { %v156_v8 = vadd.f32 %v155_v7, %v154_v6 }
  0xf3   :  { %v95_v9 = vmul.f32 0.00390625, %v156_v8 }
  0xf5   :  { %v96_v10 = vadd.f32 1e-05, %v95_v9 }
  0xf7   :  { %162 = vrsqrt.f32 %v96_v10 }
 0x104   :  { %v163_v11 = vpop.eup %162 }
 0x105   :  { %100 = vperm.xlu0 %161, %v163_v11  }
 0x180   :  { %v101_v12 = vpop.permute.xlu0 %100 }
 0x181   :  { %v103_v13 = vmul.f32 %v101_v12, %v21_v3  ;;  %v104_v14 = vmul.f32 %v101_v12, %v22_v1 }
 0x183   :  { %105 = vst [vmem:[#allocation5] sm:$0xff] %v103_v13  ;;  %106 = vst [vmem:[#allocation5 + $0x8] sm:$0xff] %v104_v14 }
 0x184   :  { %195 = shalt.err (!%p192_p9)
}
 0x185   :  { %116 = dma.vmem_to_hbm [thread:$0]  %s114_s11, 256, %s229_s1, [#allocation4]  }
 0x186   :  { %206 = dma.done.wait [#allocation4], 256  }
 0x187   :  { %207 = vsyncadd [#allocation4], 4294967040 }
 0x188   :  { %120 = vsyncpa [#allocation3], 1 }
 0x189   :  { %121 = vsyncpa [#allocation4], 1 }

</bundles_post_ra>
